<compile_context>
chip_gen: v7x
topology: tpu7x:2x2x1
jax: 0.10.0
libtpu: 0.0.40
codegen_flags: <defaults>
</compile_context>

<pallas_src>
import jax
import jax.numpy as jnp
from jax.experimental import pallas as pl
from jax.experimental.pallas import tpu as pltpu


def fm_kernel(u_ref, i_ref, sh_ref, b_ref, o_ref):
    # Elementwise interaction + ReLU on the VPU (packed: r batch rows per
    # 128-lane row).
    fm = jnp.maximum(u_ref[...] * i_ref[...], 0.0)                   # [tbp, lanes]
    # TODO(synk): dropout is identity in eval mode; a training-mode path would
    # use pltpu.prng_seed + pltpu.stateful_bernoulli.
    # Segmented (per-batch-slot) weighted reduce as one K-dense matmul against
    # the constant block-diagonal h matrix.
    pred = jnp.dot(fm, sh_ref[...], preferred_element_type=jnp.float32)  # [tbp, r]
    o_ref[...] = pred + b_ref[...]


def fm_forward(u_feat, i_feat, u_id, i_id, params, *, batch_tile=8192):
    """FM head forward. Tiny embedding gathers + bias fold stay in plain JAX;
    the multiply/relu/segmented-reduce/bias hot path runs in the Pallas kernel."""
    bz, D = u_feat.shape

    # Fold all three biases into a single [bz, 1] array -> one small DMA stream.
    bias = (params["user_bias"][u_id]
            + params["item_bias"][i_id]
            + params["g_bias"].reshape(1, 1)).astype(jnp.float32)    # [bz, 1]
    h = params["h"].reshape(D).astype(jnp.float32)                   # [D]

    # Lane packing factor: r batch rows per 128-lane vector row (free reshape).
    r = (128 // D) if (D <= 128 and 128 % D == 0) else 1
    lanes = r * D

    # Pad bz to a multiple of r (at most r-1 rows) so the packing reshape works.
    pad = (-bz) % r
    if pad:
        u_feat = jnp.pad(u_feat, ((0, pad), (0, 0)))
        i_feat = jnp.pad(i_feat, ((0, pad), (0, 0)))
        bias = jnp.pad(bias, ((0, pad), (0, 0)))
    bzp = (bz + pad) // r

    u_p = u_feat.astype(jnp.float32).reshape(bzp, lanes)
    i_p = i_feat.astype(jnp.float32).reshape(bzp, lanes)
    b_p = bias.reshape(bzp, r)

    # Block-diagonal [lanes, r] matrix with h folded in:
    #   sh[l, j] = h[l - j*D] if j*D <= l < (j+1)*D else 0
    lane = jnp.arange(lanes)
    sh = jnp.where((lane // D)[:, None] == jnp.arange(r)[None, :],
                   jnp.tile(h, r)[:, None], 0.0).astype(jnp.float32)  # [lanes, r]

    # Batch tile in packed rows: as large as possible (amortizes ~0.35 us/step
    # grid overhead); for small batches use the full array as one block.
    tbp_max = max(batch_tile // r, 8)
    if bzp <= tbp_max:
        tbp = bzp                                # block == full array dims: legal
    else:
        tbp = max((tbp_max // 8) * 8, 8)         # multiple of 8 for (8,128) rule
    grid = (pl.cdiv(bzp, tbp),)

    cost = pl.CostEstimate(
        flops=4 * bz * D,                        # mul, relu(cmp/sel), dot mul+add
        transcendentals=0,
        bytes_accessed=2 * bz * D * 4 + 2 * bz * 4 + lanes * r * 4,
    )

    out_p = pl.pallas_call(
        fm_kernel,
        out_shape=jax.ShapeDtypeStruct((bzp, r), jnp.float32),
        grid=grid,
        in_specs=[
            pl.BlockSpec((tbp, lanes), lambda i: (i, 0)),   # packed u_feat
            pl.BlockSpec((tbp, lanes), lambda i: (i, 0)),   # packed i_feat
            pl.BlockSpec((lanes, r), lambda i: (0, 0)),     # block-diag h (resident)
            pl.BlockSpec((tbp, r), lambda i: (i, 0)),       # folded bias
        ],
        out_specs=pl.BlockSpec((tbp, r), lambda i: (i, 0)),
        compiler_params=pltpu.CompilerParams(
            dimension_semantics=("parallel",),
        ),
        cost_estimate=cost,
    )(u_p, i_p, sh, b_p)

    # Free reshape back to [bz_pad, 1], then drop padded rows.
    return out_p.reshape(-1, 1)[:bz]


def init_params(key, user_size, item_size, latent_dim,
                user_padding_idx, item_padding_idx):
    bound = 0.1
    k_h, k_u, k_i = jax.random.split(key, 3)
    h = jax.random.uniform(k_h, (latent_dim, 1), jnp.float32, -bound, bound)
    user_bias = jax.random.uniform(k_u, (user_size, 1), jnp.float32, -bound, bound)
    item_bias = jax.random.uniform(k_i, (item_size, 1), jnp.float32, -bound, bound)
    # padding_idx rows are zeroed, matching nn.Embedding(padding_idx=...)
    user_bias = user_bias.at[user_padding_idx].set(0.0)
    item_bias = item_bias.at[item_padding_idx].set(0.0)
    g_bias = jnp.full((1,), bound, jnp.float32)
    return {"h": h, "user_bias": user_bias, "item_bias": item_bias,
            "g_bias": g_bias}


def _reference(u_feat, i_feat, u_id, i_id, params):
    fm = jnp.maximum(u_feat * i_feat, 0.0)
    return (fm @ params["h"]
            + params["user_bias"][u_id]
            + params["item_bias"][i_id]
            + params["g_bias"])


if __name__ == "__main__":
    key = jax.random.PRNGKey(0)

    user_size, item_size = 16, 16
    latent_dim = 32
    user_padding_idx, item_padding_idx = 0, 0

    k_params, k_data = jax.random.split(key)
    params = init_params(k_params, user_size, item_size, latent_dim,
                         user_padding_idx, item_padding_idx)

    ok = True
    # Two batch sizes: one aligned to the lane-packing factor (bz=8) and one
    # ragged (bz=11) to exercise the padding / partial-block path.
    for bz in (8, 11):
        k_uf, k_if, k_uid, k_iid, k_data = jax.random.split(k_data, 5)
        u_feat = jax.random.normal(k_uf, (bz, latent_dim), jnp.float32)
        i_feat = jax.random.normal(k_if, (bz, latent_dim), jnp.float32)
        u_id = jax.random.randint(k_uid, (bz,), 0, user_size)
        i_id = jax.random.randint(k_iid, (bz,), 0, item_size)

        pred = fm_forward(u_feat, i_feat, u_id, i_id, params)
        jax.block_until_ready(pred)

        ref = _reference(u_feat, i_feat, u_id, i_id, params)
        ok = ok and pred.shape == (bz, 1)
        ok = ok and bool(jnp.allclose(pred, ref, atol=1e-5, rtol=1e-5))

    assert ok
    print("KERNEL_OK")
</pallas_src>

<mosaic_0001>
module attributes {stable_mosaic.version = 11 : i64} {
  func.func @fm_kernel(%arg0: i32, %arg1: memref<2x128xf32, #tpu.memory_space<vmem>>, %arg2: memref<2x128xf32, #tpu.memory_space<vmem>>, %arg3: memref<128x4xf32, #tpu.memory_space<vmem>>, %arg4: memref<2x4xf32, #tpu.memory_space<vmem>>, %arg5: memref<2x4xf32, #tpu.memory_space<vmem>>) attributes {dimension_semantics = [#tpu.dimension_semantics<parallel>], iteration_bounds = array<i64: 1>, scalar_prefetch = 0 : i64, scratch_operands = 0 : i64, tpu.core_type = #tpu.core_type<tc>, window_params = [{transform_indices = @transform_0, window_bounds = array<i64: 2, 128>}, {transform_indices = @transform_1, window_bounds = array<i64: 2, 128>}, {pipeline_mode = #tpu.pipeline_mode<synchronous>, transform_indices = @transform_2, window_bounds = array<i64: 128, 4>}, {transform_indices = @transform_3, window_bounds = array<i64: 2, 4>}, {transform_indices = @transform_4, window_bounds = array<i64: 2, 4>}]} {
    %c0 = arith.constant 0 : index
    %c0_0 = arith.constant 0 : index
    %0 = vector.load %arg1[%c0, %c0_0] : memref<2x128xf32, #tpu.memory_space<vmem>>, vector<2x128xf32>
    %c0_1 = arith.constant 0 : index
    %c0_2 = arith.constant 0 : index
    %1 = vector.load %arg2[%c0_1, %c0_2] : memref<2x128xf32, #tpu.memory_space<vmem>>, vector<2x128xf32>
    %2 = arith.mulf %0, %1 : vector<2x128xf32>
    %cst = arith.constant 0.000000e+00 : f32
    %3 = vector.broadcast %cst : f32 to vector<2x128xf32>
    %4 = arith.maximumf %2, %3 : vector<2x128xf32>
    %c0_3 = arith.constant 0 : index
    %c0_4 = arith.constant 0 : index
    %5 = vector.load %arg3[%c0_3, %c0_4] : memref<128x4xf32, #tpu.memory_space<vmem>>, vector<128x4xf32>
    %cst_5 = arith.constant dense<0.000000e+00> : vector<2x4xf32>
    %6 = tpu.matmul %4, %5, %cst_5 {dimension_numbers = #tpu.dot_dimension_numbers<[1], [0], [0], [1], [0, 0, 1, 1], [], []>} : vector<2x128xf32>, vector<128x4xf32>, vector<2x4xf32> -> vector<2x4xf32>
    %c0_6 = arith.constant 0 : index
    %c0_7 = arith.constant 0 : index
    %7 = vector.load %arg4[%c0_6, %c0_7] : memref<2x4xf32, #tpu.memory_space<vmem>>, vector<2x4xf32>
    %8 = arith.addf %6, %7 : vector<2x4xf32>
    %c0_8 = arith.constant 0 : index
    %c0_9 = arith.constant 0 : index
    %9 = vector.load %arg5[%c0_8, %c0_9] : memref<2x4xf32, #tpu.memory_space<vmem>>, vector<2x4xf32>
    tpu.vector_store %arg5[%c0_8, %c0_9], %8 {strides = array<i32>} : memref<2x4xf32, #tpu.memory_space<vmem>>, vector<2x4xf32>,
    return
  }
  func.func @transform_0(%arg0: i32) -> (i32, i32) {
    %c0_i32 = arith.constant 0 : i32
    %c0_i32_0 = arith.constant 0 : i32
    return %arg0, %c0_i32 : i32, i32
  }
  func.func @transform_1(%arg0: i32) -> (i32, i32) {
    %c0_i32 = arith.constant 0 : i32
    %c0_i32_0 = arith.constant 0 : i32
    return %arg0, %c0_i32 : i32, i32
  }
  func.func @transform_2(%arg0: i32) -> (i32, i32) {
    %c0_i32 = arith.constant 0 : i32
    %c0_i32_0 = arith.constant 0 : i32
    %c0_i32_1 = arith.constant 0 : i32
    return %c0_i32, %c0_i32_0 : i32, i32
  }
  func.func @transform_3(%arg0: i32) -> (i32, i32) {
    %c0_i32 = arith.constant 0 : i32
    %c0_i32_0 = arith.constant 0 : i32
    return %arg0, %c0_i32 : i32, i32
  }
  func.func @transform_4(%arg0: i32) -> (i32, i32) {
    %c0_i32 = arith.constant 0 : i32
    %c0_i32_0 = arith.constant 0 : i32
    return %arg0, %c0_i32 : i32, i32
  }
}

</mosaic_0001>

<bundles_post_ra>
// kernel: tpu_custom_call.1
= control target key start
LH: loop header
LB: loop body
LE: loop exit
PB: predicated region body
PF: predicated region fallthrough
CT: control target
= control target key end

     0   :  { %v229_v3 = vmov 0.0|0.0   ;;  %vm230_vm0 = vmmov 0   ;;  %v231_v6 = vmov 0.0   ;;  %s327_s0 = inlined_call_operand.vmem [shape: f32[2,128], index: 0, kind: input, shape index: {}]   ;;  %s328_s1 = inlined_call_operand.vmem [shape: f32[2,128], index: 1, kind: input, shape index: {}]   ;;  %s329_s2 = inlined_call_operand.vmem [shape: f32[128,4], index: 2, kind: input, shape index: {}]   ;;  %s330_s3 = inlined_call_operand.vmem [shape: f32[2,4], index: 3, kind: input, shape index: {}]   ;;  %s331_s4 = inlined_call_operand.hbm [shape: f32[2,4], index: 4, kind: output, shape index: {}]  }
   0x1   :  { %v22_v0 = vld [vmem:[%s329_s2] sm:$0xff]  ;;  %v23_v1 = vld [vmem:[%s329_s2 + $0x8] sm:$0xff]  ;;  %v24_v2 = vld [vmem:[%s329_s2 + $0x10] sm:$0xff]  ;;  %177 = vmatprep.subr.bf16.mxu0 %v229_v3  ;;  %174 = vmatprep.mubr.msk.f32.mxu0 %vm230_vm0, %v231_v6 }
   0x2   :  { %v178_v4 = vpack.c.bf16 %v23_v1, %v22_v0  ;;  %v25_v5 = vld [vmem:[%s329_s2 + $0x18] sm:$0xff]  ;;  %v26_v8 = vld [vmem:[%s329_s2 + $0x20] sm:$0xff]  ;;  %v27_v9 = vld [vmem:[%s329_s2 + $0x28] sm:$0xff] }
   0x3   :  { %v181_v7 = vpack.c.bf16 %v25_v5, %v24_v2 }
   0x4   :  { %179 = vmatpush3.bf16.msra.mxu0 %v178_v4 }
   0x5   :  { %180 = vmatprep.subr.bf16.mxu0 %v229_v3 }
   0x6   :  { %9 = vsyncpa [#allocation3], 0  ;;  %v184_v10 = vpack.c.bf16 %v27_v9, %v26_v8  ;;  %v28_v11 = vld [vmem:[%s329_s2 + $0x30] sm:$0xff]  ;;  %v29_v12 = vld [vmem:[%s329_s2 + $0x38] sm:$0xff]  ;;  %vm109_vm1 = vcmask 25600  }
   0x7   :  { %v187_v13 = vpack.c.bf16 %v29_v12, %v28_v11  ;;  %v30_v14 = vld [vmem:[%s329_s2 + $0x40] sm:$0xff]  ;;  %v31_v15 = vld [vmem:[%s329_s2 + $0x48] sm:$0xff]  ;;  %v32_v17 = vld [vmem:[%s329_s2 + $0x50] sm:$0xff] }
   0x8   :  { %182 = vmatpush3.bf16.msra.mxu0 %v181_v7  ;;  %v190_v16 = vpack.c.bf16 %v31_v15, %v30_v14  ;;  %v33_v18 = vld [vmem:[%s329_s2 + $0x58] sm:$0xff]  ;;  %v34_v20 = vld [vmem:[%s329_s2 + $0x60] sm:$0xff]  ;;  %v35_v21 = vld [vmem:[%s329_s2 + $0x68] sm:$0xff] }
   0x9   :  { %183 = vmatprep.subr.bf16.mxu0 %v229_v3  ;;  %v193_v19 = vpack.c.bf16 %v33_v18, %v32_v17  ;;  %v196_v22 = vpack.c.bf16 %v35_v21, %v34_v20  ;;  %v18_v23 = vld [vmem:[%s327_s0] sm:$0x3]  ;;  %v36_v25 = vld [vmem:[%s329_s2 + $0x70] sm:$0xff]  ;;  %v37_v26 = vld [vmem:[%s329_s2 + $0x78] sm:$0xff] }
   0xa   :  { %v19_v24 = vld [vmem:[%s328_s1] sm:$0x3]  ;;  %v199_v28 = vpack.c.bf16 %v37_v26, %v36_v25  ;;  %s232_s1 = smov [#allocation2]  }
   0xb   :  { %v20_v27 = vmul.f32 %v19_v24, %v18_v23  ;;  %v38_v30 = vld [vmem:[%s330_s3] sm:$0x3]  ;;  %s117_s26 = sshll.u32 %s232_s1, 4  ;;  %s118_s26 = int_to_ptr.vmem [resolvable:$true] %s117_s26 }
   0xc   :  { %185 = vmatpush3.bf16.msra.mxu0 %v184_v10  ;;  %s205_s2 = scalar_lea.vmem %s118_s26, 32  ;;  %p210_p1 = scmp.lt.s32.totalorder %s118_s26, %s118_s26 }
   0xd   :  { %186 = vmatprep.subr.bf16.mxu0 %v229_v3  ;;  %v21_v29 = vmax.f32 %v20_v27, 0.0  ;;  %p206_p0 = scmp.ne.s32.totalorder %s118_s26, %s205_s2  ;;  %p211_p2 = scmp.lt.s32.totalorder %s205_s2, %s205_s2 }
   0xf   :  { %p212_p3 = por %p211_p2, %p210_p1 }
  0x10   :  { %188 = vmatpush3.bf16.msra.mxu0 %v187_v13 }
  0x11   :  { %189 = vmatprep.subr.bf16.mxu0 %v229_v3  ;;  %p213_p4 = pnand %p212_p3, %p206_p0 }
  0x14   :  { %191 = vmatpush3.bf16.msra.mxu0 %v190_v16 }
  0x15   :  { %192 = vmatprep.subr.bf16.mxu0 %v229_v3 }
  0x18   :  { %194 = vmatpush3.bf16.msra.mxu0 %v193_v19 }
  0x19   :  { %195 = vmatprep.subr.bf16.mxu0 %v229_v3 }
  0x1c   :  { %197 = vmatpush3.bf16.msra.mxu0 %v196_v22 }
  0x1d   :  { %198 = vmatprep.subr.bf16.mxu0 %v229_v3 }
  0x20   :  { %200 = vmatpush3.bf16.msra.mxu0 %v199_v28 }
  0x23   :  { %175 = vmatmul.mubr.f32.vlgmr.msra.gmra.mrb[0].mxu0 %v21_v29 }
  0xf6   :  { %v105_v31 = vpop.f32.mrb[0].mxu0 }
  0xf7   :  { %v106_v32 = vadd.f32 %v105_v31, %v38_v30  ;;  %v176_v33 = vpop.f32.mrb[1].mxu0 }
  0xf9   :  { %110 = vst.msk [vmem:[#allocation2] sm:$0x3] %vm109_vm1, %v106_v32 }
  0xfa   :  { %216 = shalt.err (!%p213_p4)
}
  0xfb   :  { %s217_s29 = scalar_lea.hbm %s331_s4, 32 }
  0xfc   :  { %p218_p5 = scmp.ne.s32.totalorder %s331_s4, %s217_s29  ;;  %p221_p6 = scmp.lt.u32.totalorder %s217_s29, %s331_s4 }
  0xfe   :  { %p223_p7 = pnand %p221_p6, %p218_p5 }
 0x100   :  { %226 = shalt.err (!%p223_p7)
}
 0x101   :  { %120 = dma.vmem_to_hbm [thread:$0]  %s118_s26, 32, %s331_s4, [#allocation3]  }
 0x102   :  { %227 = dma.done.wait [#allocation3], 32  }
 0x103   :  { %228 = vsyncadd [#allocation3], 4294967264 }
 0x104   :  { %124 = vsyncpa [#allocation3], 1 }

</bundles_post_ra>
